<compile_context>
chip_gen: v6e
topology: v6e:2x2x1
jax: 0.10.0
libtpu: 0.0.40
codegen_flags: <defaults>
</compile_context>

<pallas_src>
import functools
import math

import jax
import jax.numpy as jnp
from jax import lax
from jax.experimental import pallas as pl
from jax.experimental.pallas import tpu as pltpu


def _soft_resample_kernel(tri_ref, w_ref, u_ref, s_ref,
                          out_s_ref, out_w_ref,
                          acc_s_ref, acc_w_ref, carry_ref, *,
                          log_a, log_b, log_n, chunk, num_chunks, lane_aligned):
    c = pl.program_id(1)
    bt = s_ref.shape[0]
    st_dtype = s_ref.dtype

    @pl.when(c == 0)
    def _():
        acc_s_ref[...] = jnp.zeros_like(acc_s_ref)
        acc_w_ref[...] = jnp.zeros_like(acc_w_ref)
        carry_ref[...] = jnp.zeros_like(carry_ref)

    w_c = w_ref[...][:, 0, :]                                 # (bt, C) f32
    u = u_ref[...][:, 0, :]                                   # (bt, N) f32, lane-dense

    # soft weights for this source chunk (EUP transcendentals, O(bt*C) only)
    a = w_c + jnp.float32(log_a)
    b = jnp.float32(log_b)
    m = jnp.maximum(a, b)
    soft_w = m + jnp.log(jnp.exp(a - m) + jnp.exp(b - m))     # logaddexp
    p_c = jnp.exp(soft_w)                                     # (bt, C)
    # clamp so the one-hot matmul never forms 0 * (-inf) = NaN when a particle
    # has log-weight == -inf; -inf is restored in the finalize step below.
    diff_c = jnp.maximum(w_c - soft_w, jnp.float32(-1e30))    # (bt, C)

    carry = carry_ref[...]                                    # (bt, 1) inclusive csum so far
    ub = jnp.dot(p_c, tri_ref[...], preferred_element_type=jnp.float32) + carry
    carry_ref[...] = ub[:, chunk - 1:chunk]                   # exact shared edge -> next chunk

    lane = lax.broadcasted_iota(jnp.int32, (bt, chunk), 1)
    first_edge = jnp.where(c == 0, -jnp.inf, carry)           # (bt, 1)
    if lane_aligned:
        # lb[j] = ub[j-1] bit-identically (shared bin edges) via a 1-lane XLU
        # rotation; lane 0 takes the running carry (-inf on the very first
        # chunk so u == 0.0 still lands in bin 0).
        lb = pltpu.roll(ub, shift=1, axis=1)
        lb = jnp.where(lane == 0, first_edge, lb)
    else:
        # tiny / ragged particle counts (single chunk < 128 lanes): strict
        # triangular matmul fallback; column j of tri_excl accumulates the same
        # term sequence as column j-1 of tri_incl, so the shared edges are
        # still bit-identical (no double / zero selection at bin boundaries).
        row_i = lax.broadcasted_iota(jnp.int32, (chunk, chunk), 0)
        col_i = lax.broadcasted_iota(jnp.int32, (chunk, chunk), 1)
        tri_excl = (row_i < col_i).astype(jnp.float32)
        lb = jnp.dot(p_c, tri_excl, preferred_element_type=jnp.float32) + carry
        lb = jnp.where(lane == 0, first_edge, lb)
    # absorb u beyond the (rounded) total mass into the last particle
    ub = jnp.where(jnp.logical_and(c == num_chunks - 1, lane == chunk - 1),
                   jnp.inf, ub)

    # one-hot selection mask over (source chunk, destination draw): VPU
    # compares only, lane-dense over destinations; lb/ub become columns.
    u_row = u[:, None, :]                                     # (bt, 1, N)
    sel = (u_row > lb[:, :, None]) & (u_row <= ub[:, :, None])  # (bt, C, N) bool

    # state gather on the MXU in the state's native dtype, f32 accumulation,
    # full-lane-width (N) results and stores.
    sel_m = sel.astype(st_dtype)
    acc_s_ref[...] += jnp.einsum('bdc,bcn->bdn', s_ref[...], sel_m,
                                 preferred_element_type=jnp.float32)

    # weight gather of diff = weight - soft_weight also on the MXU (no VPU
    # multiply, no cross-lane reduce).  The f32 mask is reused when the state
    # is f32; bf16 state needs one extra cast (still cheaper than the old
    # multiply + reduce path and NaN-safe thanks to the clamp above).
    if st_dtype == jnp.float32:
        sel_w = sel_m
    else:
        sel_w = sel.astype(jnp.float32)
    acc_w_ref[...] += jnp.einsum('bxc,bcn->bxn', diff_c[:, None, :], sel_w,
                                 preferred_element_type=jnp.float32)

    @pl.when(c == num_chunks - 1)
    def _():
        out_s_ref[...] = acc_s_ref[...].astype(out_s_ref.dtype)
        aw = acc_w_ref[...]
        out_w_ref[...] = jnp.where(aw <= jnp.float32(-1e29), -jnp.inf,
                                   aw - jnp.float32(log_n))


def _vmem_budget_and_limit():
    """Generation-aware VMEM sizing: ~1/2 of physical as the tiling budget and
    ~3/4 as the compiler limit (64/96 MiB on v5e/v6e, 32/48 MiB on v7x)."""
    try:
        cap = int(pltpu.get_tpu_info().vmem_capacity_bytes)
    except Exception:
        cap = 64 * 1024 * 1024        # conservative fallback (v7x per-TC size)
    return cap // 2, (cap * 3) // 4


def _default_chunk(N):
    if N % 128 != 0:
        return N                      # tiny / ragged: single chunk
    if N % 256 == 0:
        try:
            kind = jax.devices()[0].device_kind.lower()
        except Exception:
            kind = ""
        # 256-deep MXU on v6e / v7x; v5e and older are 128 deep -> keep K=128.
        if not any(v in kind for v in ("v2", "v3", "v4", "v5")):
            return 256
    return 128


def _pick_batch_tile(B, N, D, chunk, state_itemsize, budget):
    """Largest divisor of B whose per-step VMEM footprint fits the budget,
    capped so the parallel grid axis keeps >= 4 steps (v7x: 2 TCs, each needing
    >= 2 steps for DMA/compute overlap)."""
    it = state_itemsize
    per_b = (2 * D * chunk * it          # state chunk in (double-buffered)
             + 2 * D * N * it            # resampled state out (double-buffered)
             + 8 * D * N                 # f32 accumulator + matmul result temp
             + chunk * N * (2 + it + 4)  # bool mask + dtype cast(s) + slack
             + 2 * chunk * 4 + 2 * N * 4  # weight / u input blocks
             + 16 * N + 16 * chunk)      # acc_w, edges, misc temps
    fixed = 8 * chunk * chunk            # hoisted triangular matrix
    cap = max(1, (budget - fixed) // per_b)
    if B >= 4:
        cap = min(cap, B // 4)
    elif B >= 2:
        cap = min(cap, B // 2)
    bt = 1
    for cand in range(1, min(B, cap) + 1):
        if B % cand == 0:
            bt = cand
    return bt


def soft_resample(state, weight, u, softness, *, chunk=None):
    """Soft resampling (Karkus et al. 2018) with a multinomial base resampler.

    state: (B, N, D) particles (any float dtype, kept native)
    weight: (B, N) normalized log-weights (f32)
    u: (B, N) iid uniforms in [0, 1), one per resampling draw
    """
    if not (0.0 < softness < 1.0):
        raise ValueError("softness must be in (0, 1) for the soft path")
    B, N, D = state.shape
    log_a = math.log(softness)
    log_b = math.log1p(-softness) - math.log(N)
    log_n = math.log(N)

    if chunk is None:
        chunk = _default_chunk(N)
    assert N % chunk == 0
    num_chunks = N // chunk

    budget, vmem_limit = _vmem_budget_and_limit()
    bt = _pick_batch_tile(B, N, D, chunk, state.dtype.itemsize, budget)
    grid = (B // bt, num_chunks)

    # lane-dense layouts: weight / u / out_weight travel as (B, 1, N); the state
    # is transposed to (B, D, N) so the gather result and its HBM writeback are
    # lane-dense over the particle axis instead of the (often tiny) state dim.
    w3 = weight.reshape(B, 1, N).astype(jnp.float32)
    u3 = u.reshape(B, 1, N).astype(jnp.float32)
    state_t = jnp.swapaxes(state, 1, 2)                        # (B, D, N)

    # inclusive (k <= j) triangular matrix, built once on the host and kept
    # resident in VMEM across grid steps via a constant index_map.
    tri = (jnp.arange(chunk, dtype=jnp.int32)[:, None]
           <= jnp.arange(chunk, dtype=jnp.int32)[None, :]).astype(jnp.float32)

    kernel = functools.partial(
        _soft_resample_kernel, log_a=log_a, log_b=log_b, log_n=log_n,
        chunk=chunk, num_chunks=num_chunks, lane_aligned=(chunk % 128 == 0))

    cost = pl.CostEstimate(
        flops=2 * B * N * N * (D + 1) + 2 * B * N * chunk + 16 * B * N,
        transcendentals=3 * B * N,
        bytes_accessed=2 * B * N * D * state.dtype.itemsize + 4 * B * N * 4)

    out_state_t, out_w = pl.pallas_call(
        kernel,
        out_shape=(jax.ShapeDtypeStruct((B, D, N), state.dtype),
                   jax.ShapeDtypeStruct((B, 1, N), jnp.float32)),
        grid_spec=pltpu.PrefetchScalarGridSpec(
            num_scalar_prefetch=0,
            grid=grid,
            in_specs=[
                pl.BlockSpec((chunk, chunk), lambda b, c: (0, 0)),   # tri (resident)
                pl.BlockSpec((bt, 1, chunk), lambda b, c: (b, 0, c)),  # weight chunk
                pl.BlockSpec((bt, 1, N), lambda b, c: (b, 0, 0)),      # uniforms (full row)
                pl.BlockSpec((bt, D, chunk), lambda b, c: (b, 0, c)),  # state chunk
            ],
            out_specs=[
                pl.BlockSpec((bt, D, N), lambda b, c: (b, 0, 0)),      # resampled state
                pl.BlockSpec((bt, 1, N), lambda b, c: (b, 0, 0)),      # new log-weights
            ],
            scratch_shapes=[
                pltpu.VMEM((bt, D, N), jnp.float32),                   # state accumulator
                pltpu.VMEM((bt, 1, N), jnp.float32),                   # weight accumulator
                pltpu.VMEM((bt, 1), jnp.float32),                      # CDF carry
            ]),
        compiler_params=pltpu.CompilerParams(
            dimension_semantics=("parallel", "arbitrary"),
            vmem_limit_bytes=int(vmem_limit)),
        cost_estimate=cost,
    )(tri, w3, u3, state_t)

    return jnp.swapaxes(out_state_t, 1, 2), out_w.reshape(B, N)


def _reference(state, weight, u, softness):
    """Pure-JAX reference of the same forward pass."""
    B, N, D = state.shape
    soft_w = jnp.logaddexp(weight + math.log(softness),
                           math.log1p(-softness) - math.log(N))
    csum = jnp.cumsum(jnp.exp(soft_w), axis=1)
    idx = jnp.sum((u[:, :, None] > csum[:, None, :]).astype(jnp.int32), axis=-1)
    idx = jnp.minimum(idx, N - 1)
    res_state = jnp.take_along_axis(state, idx[:, :, None], axis=1)
    out_w = (jnp.take_along_axis(weight, idx, axis=1)
             - jnp.take_along_axis(soft_w, idx, axis=1) - math.log(N))
    return res_state, out_w


def _bin_midpoint_uniforms(u, weight, softness):
    """Snap each uniform onto the midpoint of the CDF bin it already falls in.

    The forward pass is piecewise constant in u with jumps at the cumulative
    soft-weight values; testing exactly at a jump would make the comparison
    sensitive to benign last-ulp summation-order differences between the kernel
    and the reference.  Midpoints are still valid inputs in [0, 1) and sit at
    least (1-softness)/(2N) away from every jump.
    """
    B, N = weight.shape
    soft_w = jnp.logaddexp(weight + math.log(softness),
                           math.log1p(-softness) - math.log(N))
    csum = jnp.cumsum(jnp.exp(soft_w), axis=1)
    idx = jnp.minimum(
        jnp.sum((u[:, :, None] > csum[:, None, :]).astype(jnp.int32), axis=-1),
        N - 1)
    hi = jnp.take_along_axis(csum, idx, axis=1)
    lo = jnp.where(idx == 0, 0.0,
                   jnp.take_along_axis(csum, jnp.maximum(idx - 1, 0), axis=1))
    return jnp.clip(0.5 * (lo + hi), 0.0, 1.0 - 1e-6)


def _run_case(key, B, N, D, softness, state_dtype, chunk=None):
    k1, k2, k3 = jax.random.split(key, 3)
    state = jax.random.normal(k1, (B, N, D), dtype=jnp.float32).astype(state_dtype)
    weight = jax.nn.log_softmax(
        jax.random.normal(k2, (B, N), dtype=jnp.float32), axis=-1)
    u = jax.random.uniform(k3, (B, N), dtype=jnp.float32)
    u = _bin_midpoint_uniforms(u, weight, softness)

    out_state, out_weight = soft_resample(state, weight, u, softness, chunk=chunk)
    out_state = jax.block_until_ready(out_state)
    out_weight = jax.block_until_ready(out_weight)

    ref_state, ref_weight = _reference(state, weight, u, softness)

    assert out_state.shape == (B, N, D) and out_state.dtype == state_dtype
    assert out_weight.shape == (B, N)
    assert bool(jnp.all(jnp.isfinite(out_state.astype(jnp.float32))))
    assert bool(jnp.all(jnp.isfinite(out_weight)))
    assert bool(jnp.allclose(out_state.astype(jnp.float32),
                             ref_state.astype(jnp.float32),
                             atol=1e-5, rtol=1e-5))
    assert bool(jnp.allclose(out_weight, ref_weight, atol=1e-5, rtol=1e-5))


if __name__ == "__main__":
    key = jax.random.PRNGKey(0)
    k1, k2, k3, k4 = jax.random.split(key, 4)
    # 1) tiny particle count: single sub-128 chunk, strict-triangular fallback
    _run_case(k1, B=2, N=8, D=32, softness=0.5, state_dtype=jnp.float32)
    # 2) lane-aligned particle count: single 128-wide chunk, roll-derived edges
    _run_case(k2, B=2, N=128, D=32, softness=0.7, state_dtype=jnp.float32)
    # 3) multi-chunk carry path over the grid reduction axis + bf16 state
    _run_case(k3, B=4, N=256, D=16, softness=0.3, state_dtype=jnp.bfloat16,
              chunk=128)
    # 4) more than one batch per grid step (bt = 2)
    _run_case(k4, B=8, N=128, D=16, softness=0.6, state_dtype=jnp.float32)
    print("KERNEL_OK")
</pallas_src>

<mosaic_0001>
module attributes {stable_mosaic.version = 11 : i64} {
  func.func @_soft_resample_kernel(%arg0: i32, %arg1: i32, %arg2: memref<8x8xf32, #tpu.memory_space<vmem>>, %arg3: memref<1x1x8xf32, #tpu.memory_space<vmem>>, %arg4: memref<1x1x8xf32, #tpu.memory_space<vmem>>, %arg5: memref<1x32x8xf32, #tpu.memory_space<vmem>>, %arg6: memref<1x32x8xf32, #tpu.memory_space<vmem>>, %arg7: memref<1x1x8xf32, #tpu.memory_space<vmem>>, %arg8: memref<1x32x8xf32, #tpu.memory_space<vmem>>, %arg9: memref<1x1x8xf32, #tpu.memory_space<vmem>>, %arg10: memref<1x1xf32, #tpu.memory_space<vmem>>) attributes {dimension_semantics = [#tpu.dimension_semantics<parallel>, #tpu.dimension_semantics<arbitrary>], iteration_bounds = array<i64: 2, 1>, scalar_prefetch = 0 : i64, scratch_operands = 3 : i64, tpu.core_type = #tpu.core_type<tc>, window_params = [{pipeline_mode = #tpu.pipeline_mode<synchronous>, transform_indices = @transform_0, window_bounds = array<i64: 8, 8>}, {transform_indices = @transform_1, window_bounds = array<i64: 1, 1, 8>}, {transform_indices = @transform_2, window_bounds = array<i64: 1, 1, 8>}, {transform_indices = @transform_3, window_bounds = array<i64: 1, 32, 8>}, {transform_indices = @transform_4, window_bounds = array<i64: 1, 32, 8>}, {transform_indices = @transform_5, window_bounds = array<i64: 1, 1, 8>}]} {
    %c0_i32 = arith.constant 0 : i32
    %0 = arith.cmpi eq, %arg1, %c0_i32 : i32
    %1 = arith.extui %0 : i1 to i32
    %c0_i32_0 = arith.constant 0 : i32
    %2 = arith.cmpi ne, %1, %c0_i32_0 : i32
    scf.if %2 {
      %cst_41 = arith.constant 0.000000e+00 : f32
      %79 = vector.broadcast %cst_41 : f32 to vector<1x32x8xf32>
      %c0_42 = arith.constant 0 : index
      %c0_43 = arith.constant 0 : index
      %c0_44 = arith.constant 0 : index
      %80 = vector.load %arg8[%c0_42, %c0_43, %c0_44] : memref<1x32x8xf32, #tpu.memory_space<vmem>>, vector<1x32x8xf32>
      tpu.vector_store %arg8[%c0_42, %c0_43, %c0_44], %79 {strides = array<i32>} : memref<1x32x8xf32, #tpu.memory_space<vmem>>, vector<1x32x8xf32>,
      %cst_45 = arith.constant 0.000000e+00 : f32
      %81 = vector.broadcast %cst_45 : f32 to vector<1x1x8xf32>
      %c0_46 = arith.constant 0 : index
      %c0_47 = arith.constant 0 : index
      %c0_48 = arith.constant 0 : index
      %82 = vector.load %arg9[%c0_46, %c0_47, %c0_48] : memref<1x1x8xf32, #tpu.memory_space<vmem>>, vector<1x1x8xf32>
      tpu.vector_store %arg9[%c0_46, %c0_47, %c0_48], %81 {strides = array<i32>} : memref<1x1x8xf32, #tpu.memory_space<vmem>>, vector<1x1x8xf32>,
      %cst_49 = arith.constant 0.000000e+00 : f32
      %83 = vector.broadcast %cst_49 : f32 to vector<1x1xf32>
      %c0_50 = arith.constant 0 : index
      %c0_51 = arith.constant 0 : index
      %84 = vector.load %arg10[%c0_50, %c0_51] : memref<1x1xf32, #tpu.memory_space<vmem>>, vector<1x1xf32>
      tpu.vector_store %arg10[%c0_50, %c0_51], %83 {strides = array<i32>} : memref<1x1xf32, #tpu.memory_space<vmem>>, vector<1x1xf32>,
    } else {
    }
    %c0 = arith.constant 0 : index
    %c0_1 = arith.constant 0 : index
    %c0_2 = arith.constant 0 : index
    %3 = vector.load %arg3[%c0, %c0_1, %c0_2] : memref<1x1x8xf32, #tpu.memory_space<vmem>>, vector<1x1x8xf32>
    %4 = vector.shape_cast %3 : vector<1x1x8xf32> to vector<1x8xf32>
    %c0_3 = arith.constant 0 : index
    %c0_4 = arith.constant 0 : index
    %c0_5 = arith.constant 0 : index
    %5 = vector.load %arg4[%c0_3, %c0_4, %c0_5] : memref<1x1x8xf32, #tpu.memory_space<vmem>>, vector<1x1x8xf32>
    %6 = vector.shape_cast %5 : vector<1x1x8xf32> to vector<1x8xf32>
    %cst = arith.constant -0.693147182 : f32
    %7 = vector.broadcast %cst : f32 to vector<1x8xf32>
    %8 = arith.addf %4, %7 : vector<1x8xf32>
    %cst_6 = arith.constant -2.77258873 : f32
    %9 = vector.broadcast %cst_6 : f32 to vector<1x8xf32>
    %10 = arith.maximumf %8, %9 : vector<1x8xf32>
    %11 = arith.subf %8, %10 : vector<1x8xf32>
    %12 = math.exp %11 : vector<1x8xf32>
    %cst_7 = arith.constant -2.77258873 : f32
    %13 = vector.broadcast %cst_7 : f32 to vector<1x8xf32>
    %14 = arith.subf %13, %10 : vector<1x8xf32>
    %15 = math.exp %14 : vector<1x8xf32>
    %16 = arith.addf %12, %15 : vector<1x8xf32>
    %17 = math.log %16 : vector<1x8xf32>
    %18 = arith.addf %10, %17 : vector<1x8xf32>
    %19 = math.exp %18 : vector<1x8xf32>
    %20 = arith.subf %4, %18 : vector<1x8xf32>
    %cst_8 = arith.constant -1.000000e+30 : f32
    %21 = vector.broadcast %cst_8 : f32 to vector<1x8xf32>
    %22 = arith.maximumf %20, %21 : vector<1x8xf32>
    %c0_9 = arith.constant 0 : index
    %c0_10 = arith.constant 0 : index
    %23 = vector.load %arg10[%c0_9, %c0_10] : memref<1x1xf32, #tpu.memory_space<vmem>>, vector<1x1xf32>
    %c0_11 = arith.constant 0 : index
    %c0_12 = arith.constant 0 : index
    %24 = vector.load %arg2[%c0_11, %c0_12] : memref<8x8xf32, #tpu.memory_space<vmem>>, vector<8x8xf32>
    %cst_13 = arith.constant dense<0.000000e+00> : vector<1x8xf32>
    %25 = tpu.matmul %19, %24, %cst_13 {dimension_numbers = #tpu.dot_dimension_numbers<[1], [0], [0], [1], [0, 0, 1, 1], [], []>} : vector<1x8xf32>, vector<8x8xf32>, vector<1x8xf32> -> vector<1x8xf32>
    %26 = vector.broadcast %23 : vector<1x1xf32> to vector<1x8xf32>
    %27 = arith.addf %25, %26 : vector<1x8xf32>
    %28 = vector.extract_strided_slice %27 {offsets = [0, 7], sizes = [1, 1], strides = [1, 1]} : vector<1x8xf32> to vector<1x1xf32>
    %c0_14 = arith.constant 0 : index
    %c0_15 = arith.constant 0 : index
    %29 = vector.load %arg10[%c0_14, %c0_15] : memref<1x1xf32, #tpu.memory_space<vmem>>, vector<1x1xf32>
    tpu.vector_store %arg10[%c0_14, %c0_15], %28 {strides = array<i32>} : memref<1x1xf32, #tpu.memory_space<vmem>>, vector<1x1xf32>,
    %30 = tpu.iota {dimensions = array<i32: 1>} : vector<1x8xi32>
    %c0_i32_16 = arith.constant 0 : i32
    %31 = arith.cmpi eq, %arg1, %c0_i32_16 : i32
    %cst_17 = arith.constant 0xFF800000 : f32
    %32 = vector.broadcast %cst_17 : f32 to vector<1x1xf32>
    %33 = arith.select %31, %32, %23 : vector<1x1xf32>
    %34 = tpu.iota {dimensions = array<i32: 0>} : vector<8x8xi32>
    %35 = tpu.iota {dimensions = array<i32: 1>} : vector<8x8xi32>
    %36 = arith.cmpi slt, %34, %35 : vector<8x8xi32>
    %37 = arith.extui %36 : vector<8x8xi1> to vector<8x8xi32>
    %38 = arith.sitofp %37 : vector<8x8xi32> to vector<8x8xf32>
    %cst_18 = arith.constant dense<0.000000e+00> : vector<1x8xf32>
    %39 = tpu.matmul %19, %38, %cst_18 {dimension_numbers = #tpu.dot_dimension_numbers<[1], [0], [0], [1], [0, 0, 1, 1], [], []>} : vector<1x8xf32>, vector<8x8xf32>, vector<1x8xf32> -> vector<1x8xf32>
    %40 = vector.broadcast %23 : vector<1x1xf32> to vector<1x8xf32>
    %41 = arith.addf %39, %40 : vector<1x8xf32>
    %c0_i32_19 = arith.constant 0 : i32
    %42 = vector.broadcast %c0_i32_19 : i32 to vector<1x8xi32>
    %43 = arith.cmpi eq, %30, %42 : vector<1x8xi32>
    %44 = vector.shape_cast %33 : vector<1x1xf32> to vector<1x1xf32>
    %45 = vector.broadcast %44 : vector<1x1xf32> to vector<1x8xf32>
    %46 = arith.select %43, %45, %41 : vector<1x8xi1>, vector<1x8xf32>
    %c0_i32_20 = arith.constant 0 : i32
    %47 = arith.cmpi eq, %arg1, %c0_i32_20 : i32
    %c7_i32 = arith.constant 7 : i32
    %48 = vector.broadcast %c7_i32 : i32 to vector<1x8xi32>
    %49 = arith.cmpi eq, %30, %48 : vector<1x8xi32>
    %50 = vector.broadcast %47 : i1 to vector<1x8xi1>
    %51 = arith.andi %50, %49 : vector<1x8xi1>
    %cst_21 = arith.constant 0x7F800000 : f32
    %52 = vector.broadcast %cst_21 : f32 to vector<1x8xf32>
    %53 = arith.select %51, %52, %27 : vector<1x8xi1>, vector<1x8xf32>
    %54 = vector.shape_cast %6 : vector<1x8xf32> to vector<1x1x8xf32>
    %55 = vector.shape_cast %46 : vector<1x8xf32> to vector<1x8x1xf32>
    %56 = vector.broadcast %54 : vector<1x1x8xf32> to vector<1x8x8xf32>
    %57 = vector.broadcast %55 : vector<1x8x1xf32> to vector<1x8x8xf32>
    %58 = arith.cmpf ogt, %56, %57 : vector<1x8x8xf32>
    %59 = vector.shape_cast %53 : vector<1x8xf32> to vector<1x8x1xf32>
    %60 = vector.broadcast %54 : vector<1x1x8xf32> to vector<1x8x8xf32>
    %61 = vector.broadcast %59 : vector<1x8x1xf32> to vector<1x8x8xf32>
    %62 = arith.cmpf ole, %60, %61 : vector<1x8x8xf32>
    %63 = arith.andi %58, %62 : vector<1x8x8xi1>
    %64 = arith.extui %63 : vector<1x8x8xi1> to vector<1x8x8xi32>
    %65 = arith.sitofp %64 : vector<1x8x8xi32> to vector<1x8x8xf32>
    %c0_22 = arith.constant 0 : index
    %c0_23 = arith.constant 0 : index
    %c0_24 = arith.constant 0 : index
    %66 = vector.load %arg8[%c0_22, %c0_23, %c0_24] : memref<1x32x8xf32, #tpu.memory_space<vmem>>, vector<1x32x8xf32>
    %c0_25 = arith.constant 0 : index
    %c0_26 = arith.constant 0 : index
    %c0_27 = arith.constant 0 : index
    %67 = vector.load %arg5[%c0_25, %c0_26, %c0_27] : memref<1x32x8xf32, #tpu.memory_space<vmem>>, vector<1x32x8xf32>
    "tpu.trace_start"() <{level = 10 : i32, message = "bdc,bcn->bdn"}> : () -> ()
    %cst_28 = arith.constant dense<0.000000e+00> : vector<1x32x8xf32>
    %68 = tpu.matmul %67, %65, %cst_28 {dimension_numbers = #tpu.dot_dimension_numbers<[2], [1], [1], [2], [0, 0, 0, 1, 1, 2], [0], [0]>} : vector<1x32x8xf32>, vector<1x8x8xf32>, vector<1x32x8xf32> -> vector<1x32x8xf32>
    "tpu.trace_stop"() : () -> ()
    %69 = arith.addf %66, %68 : vector<1x32x8xf32>
    %c0_29 = arith.constant 0 : index
    %c0_30 = arith.constant 0 : index
    %c0_31 = arith.constant 0 : index
    %70 = vector.load %arg8[%c0_29, %c0_30, %c0_31] : memref<1x32x8xf32, #tpu.memory_space<vmem>>, vector<1x32x8xf32>
    tpu.vector_store %arg8[%c0_29, %c0_30, %c0_31], %69 {strides = array<i32>} : memref<1x32x8xf32, #tpu.memory_space<vmem>>, vector<1x32x8xf32>,
    %c0_32 = arith.constant 0 : index
    %c0_33 = arith.constant 0 : index
    %c0_34 = arith.constant 0 : index
    %71 = vector.load %arg9[%c0_32, %c0_33, %c0_34] : memref<1x1x8xf32, #tpu.memory_space<vmem>>, vector<1x1x8xf32>
    %72 = vector.shape_cast %22 : vector<1x8xf32> to vector<1x1x8xf32>
    "tpu.trace_start"() <{level = 10 : i32, message = "bxc,bcn->bxn"}> : () -> ()
    %cst_35 = arith.constant dense<0.000000e+00> : vector<1x1x8xf32>
    %73 = tpu.matmul %72, %65, %cst_35 {dimension_numbers = #tpu.dot_dimension_numbers<[2], [1], [1], [2], [0, 0, 0, 1, 1, 2], [0], [0]>} : vector<1x1x8xf32>, vector<1x8x8xf32>, vector<1x1x8xf32> -> vector<1x1x8xf32>
    "tpu.trace_stop"() : () -> ()
    %74 = arith.addf %71, %73 : vector<1x1x8xf32>
    %c0_36 = arith.constant 0 : index
    %c0_37 = arith.constant 0 : index
    %c0_38 = arith.constant 0 : index
    %75 = vector.load %arg9[%c0_36, %c0_37, %c0_38] : memref<1x1x8xf32, #tpu.memory_space<vmem>>, vector<1x1x8xf32>
    tpu.vector_store %arg9[%c0_36, %c0_37, %c0_38], %74 {strides = array<i32>} : memref<1x1x8xf32, #tpu.memory_space<vmem>>, vector<1x1x8xf32>,
    %c0_i32_39 = arith.constant 0 : i32
    %76 = arith.cmpi eq, %arg1, %c0_i32_39 : i32
    %77 = arith.extui %76 : i1 to i32
    %c0_i32_40 = arith.constant 0 : i32
    %78 = arith.cmpi ne, %77, %c0_i32_40 : i32
    scf.if %78 {
      %c0_41 = arith.constant 0 : index
      %c0_42 = arith.constant 0 : index
      %c0_43 = arith.constant 0 : index
      %79 = vector.load %arg8[%c0_41, %c0_42, %c0_43] : memref<1x32x8xf32, #tpu.memory_space<vmem>>, vector<1x32x8xf32>
      %c0_44 = arith.constant 0 : index
      %c0_45 = arith.constant 0 : index
      %c0_46 = arith.constant 0 : index
      %80 = vector.load %arg6[%c0_44, %c0_45, %c0_46] : memref<1x32x8xf32, #tpu.memory_space<vmem>>, vector<1x32x8xf32>
      tpu.vector_store %arg6[%c0_44, %c0_45, %c0_46], %79 {strides = array<i32>} : memref<1x32x8xf32, #tpu.memory_space<vmem>>, vector<1x32x8xf32>,
      %c0_47 = arith.constant 0 : index
      %c0_48 = arith.constant 0 : index
      %c0_49 = arith.constant 0 : index
      %81 = vector.load %arg9[%c0_47, %c0_48, %c0_49] : memref<1x1x8xf32, #tpu.memory_space<vmem>>, vector<1x1x8xf32>
      %cst_50 = arith.constant -1.000000e+29 : f32
      %82 = vector.broadcast %cst_50 : f32 to vector<1x1x8xf32>
      %83 = arith.cmpf ole, %81, %82 : vector<1x1x8xf32>
      %cst_51 = arith.constant 2.07944155 : f32
      %84 = vector.broadcast %cst_51 : f32 to vector<1x1x8xf32>
      %85 = arith.subf %81, %84 : vector<1x1x8xf32>
      %cst_52 = arith.constant 0xFF800000 : f32
      %86 = vector.broadcast %cst_52 : f32 to vector<1x1x8xf32>
      %87 = arith.select %83, %86, %85 : vector<1x1x8xi1>, vector<1x1x8xf32>
      %c0_53 = arith.constant 0 : index
      %c0_54 = arith.constant 0 : index
      %c0_55 = arith.constant 0 : index
      %88 = vector.load %arg7[%c0_53, %c0_54, %c0_55] : memref<1x1x8xf32, #tpu.memory_space<vmem>>, vector<1x1x8xf32>
      tpu.vector_store %arg7[%c0_53, %c0_54, %c0_55], %87 {strides = array<i32>} : memref<1x1x8xf32, #tpu.memory_space<vmem>>, vector<1x1x8xf32>,
    } else {
    }
    return
  }
  func.func @transform_0(%arg0: i32, %arg1: i32) -> (i32, i32) {
    %c0_i32 = arith.constant 0 : i32
    %c0_i32_0 = arith.constant 0 : i32
    %c0_i32_1 = arith.constant 0 : i32
    return %c0_i32, %c0_i32_0 : i32, i32
  }
  func.func @transform_1(%arg0: i32, %arg1: i32) -> (i32, i32, i32) {
    %c0_i32 = arith.constant 0 : i32
    %c0_i32_0 = arith.constant 0 : i32
    return %arg0, %c0_i32, %arg1 : i32, i32, i32
  }
  func.func @transform_2(%arg0: i32, %arg1: i32) -> (i32, i32, i32) {
    %c0_i32 = arith.constant 0 : i32
    %c0_i32_0 = arith.constant 0 : i32
    %c0_i32_1 = arith.constant 0 : i32
    return %arg0, %c0_i32, %c0_i32_0 : i32, i32, i32
  }
  func.func @transform_3(%arg0: i32, %arg1: i32) -> (i32, i32, i32) {
    %c0_i32 = arith.constant 0 : i32
    %c0_i32_0 = arith.constant 0 : i32
    return %arg0, %c0_i32, %arg1 : i32, i32, i32
  }
  func.func @transform_4(%arg0: i32, %arg1: i32) -> (i32, i32, i32) {
    %c0_i32 = arith.constant 0 : i32
    %c0_i32_0 = arith.constant 0 : i32
    %c0_i32_1 = arith.constant 0 : i32
    return %arg0, %c0_i32, %c0_i32_0 : i32, i32, i32
  }
  func.func @transform_5(%arg0: i32, %arg1: i32) -> (i32, i32, i32) {
    %c0_i32 = arith.constant 0 : i32
    %c0_i32_0 = arith.constant 0 : i32
    %c0_i32_1 = arith.constant 0 : i32
    return %arg0, %c0_i32, %c0_i32_0 : i32, i32, i32
  }
}

</mosaic_0001>

<bundles_post_ra>
// kernel: tpu_custom_call.1
= control target key start
LH: loop header
LB: loop body
LE: loop exit
PB: predicated region body
PF: predicated region fallthrough
CT: control target
= control target key end

     0   :  { %11 = vsyncpa [#allocation6], 0  ;;  %s1320_s0 = inlined_call_operand.vmem [shape: f32[8,8], index: 0, kind: input, shape index: {}]   ;;  %s1321_s1 = inlined_call_operand.vmem [shape: f32[2,1,8], index: 1, kind: input, shape index: {}]   ;;  %s1322_s2 = inlined_call_operand.vmem [shape: f32[2,1,8], index: 2, kind: input, shape index: {}]   ;;  %s1323_s3 = inlined_call_operand.vmem [shape: f32[2,32,8], index: 3, kind: input, shape index: {}]   ;;  %s1324_s4 = inlined_call_operand.vmem [shape: f32[2,32,8], index: 4, kind: output, shape index: {0}]   ;;  %s1325_s5 = inlined_call_operand.hbm [shape: f32[2,1,8], index: 5, kind: output, shape index: {1}]  }
   0x1   :  { %13 = vsyncpa [#allocation6 + $0x1], 0  ;;  %s1128_s18 = smov 0   ;;  %s1130_s19 = smov 0  }
   0x2   :  { %s1132_s20 = smov 0   ;;  %s1134_s21 = smov 0  }
   0x3   :  { %s1136_s22 = smov 0   ;;  %s1138_s23 = smov 0  }
   0x4 LB: > { %s881_s24 = sadd.s32 4294967295, %s1089_s23   ;;  %s882_s25 = sadd.s32 4294967294, %s1089_s23   ;;  %s1089_s23 = sphi %s1138_s23, %s19_s23   ;;  %s1085_s22 = sphi %s1136_s22, %s1332_s22   ;;  %s1081_s21 = sphi %s1134_s21, %s1331_s21   ;;  %s1077_s20 = sphi %s1132_s20, %s1330_s20   ;;  %s1073_s19 = sphi %s1130_s19, %s1329_s19   ;;  %s1069_s18 = sphi %s1128_s18, %s1328_s18  }
   0x5   : > { %s31_s26 = sadd.s32 1, %s1085_s22  ;;  %s167_s27 = sadd.s32 1, %s1077_s20 }
   0x6   : > { %p33_p0 = scmp.ge.s32.totalorder %s31_s26, 2  ;;  %p177_p1 = scmp.ne.s32.totalorder %s1077_s20, %s1073_s19 }
   0x7   : > { %p178_p2 = scmp.eq.s32.totalorder %s881_s24, 1  ;;  %p183_p3 = scmp.ne.s32.totalorder %s1073_s19, %s1069_s18 }
   0x8   : > { %s1334_s26 = smov (%p33_p0, %s31_s26), 0  ;;  %p184_p5 = scmp.eq.s32.totalorder %s882_s25, 1 }
   0x9   : > { %p1168_p4 = por %p178_p2, %p177_p1  ;;  %s164_s29 = ssub.s32 %s1085_s22, %s1334_s26 }
   0xa   : > { %p885_p6 = scmp.ge.s32.totalorder %s1089_s23, 1  ;;  %p165_p7 = scmp.eq.s32.totalorder %s164_s29, 0 }
   0xb   : > { %p1175_p8 = por %p184_p5, %p183_p3  ;;  %p231_p9 = scmp.lt.s32.totalorder %s1089_s23, 3 }
   0xc   : > { %s1181_s6 = scalar_select %p165_p7, %s1077_s20, %s167_s27  }
   0xd   : > { %p232_p10 = pnand %p885_p6, %p231_p9 }
   0xe   : > { %p275_p11 = scmp.lt.s32.totalorder (!%p232_p10), %s1081_s21, 1  ;;  %s1096_s17 = smov (!%p232_p10), 121  }
   0xf   : > { %235 = sbr.rel (%p232_p10) target bundleno = 624 (0x270), region = 36  ;;  %s273_s29 = sand.u32 (!%p232_p10), 1, %s1073_s19  }
  0x10   : > { %s904_s11 = sshll.u32 (!%p232_p10), %s1081_s21, 4 }
  0x11   : > { %s1267_s15 = scalar_lea.hbm (!%p232_p10), %s1325_s5, %s904_s11 }
  0x14   : > { %v329_v0 = vld [vmem:[%s1320_s0] sm:$0xff]  ;;  %v335_v1 = vlaneseq  ;;  %v1091_v2 = vmov 0.0   ;;  %vm301_vm0 = vcmask 64512   ;;  %vm308_vm1 = vcmask 0   ;;  %s1194_s9 = scalar_select %p275_p11, %s1081_s21, 1 }
  0x15   : > { %920 = vmatprep.subr.mxu0 %v1091_v2  ;;  %925 = vmatprep.subr.mxu1 %v1091_v2  ;;  %vm1092_vm2 = vmmov 0   ;;  %302 = vst.msk [vmem:[#allocation2] sm:$0xff] %vm301_vm0, %v1091_v2  ;;  %303 = vst.msk [vmem:[#allocation2 + $0x8] sm:$0xff] %vm301_vm0, %v1091_v2  ;;  %v1093_v5 = vmov 0   ;;  %v1094_v6 = vmov 1.0   ;;  %v1095_v15 = vmov -inf  }
  0x16   : > { %921 = vmatpush3.msra.mxu0 %v329_v0  ;;  %922 = vmatprep.mubr.msk.f32.mxu0 %vm1092_vm2, %v1091_v2  ;;  %v336_v3 = vshrl.u32 %v335_v1, 7  ;;  %v1191_v4 = vand.u32 127, %v335_v1  ;;  %304 = vst.msk [vmem:[#allocation2 + $0x10] sm:$0xff] %vm301_vm0, %v1091_v2  ;;  %305 = vst.msk [vmem:[#allocation2 + $0x18] sm:$0xff] %vm301_vm0, %v1091_v2  ;;  %s280_s12 = scalar_lea.vmem %s1321_s1, %s1194_s9  ;;  %s907_s13 = sshll.u32 %s1194_s9, 5  ;;  %vm306_vm9 = vcmask 57344  }
  0x17   : > { %309 = vst.msk [vmem:[#allocation4] sm:$0x1] %vm308_vm1, %v1091_v2  ;;  %927 = vmatprep.mubr.msk.f32.mxu1 %vm1092_vm2, %v1091_v2  ;;  %1004 = vset.pattern.permute.xlu0 %v1093_v5  ;;  %v310_v7 = vld [vmem:[%s280_s12] sm:$0x1]  ;;  %s1225_s16 = scalar_lea.vmem %s1323_s3, %s907_s13  ;;  %s283_s27 = scalar_lea.vmem %s1322_s2, %s1194_s9 }
  0x18   : > { %vm427_vm3 = vcmp.lt.s32.totalorder %v336_v3, %v1191_v4  ;;  %v312_v8 = vadd.f32 -0.6931472, %v310_v7  ;;  %v337_v25 = vsub.s32 0, %v336_v3  ;;  %v543_v28 = vld [vmem:[%s1225_s16] sm:$0xff]  ;;  %vm500_vm4 = vcmp.eq.s32.totalorder %v1191_v4, 0  ;;  %v544_v46 = vld [vmem:[%s1225_s16 + $0x8] sm:$0xff]  ;;  %s1257_s10 = scalar_lea.vmem %s1324_s4, %s907_s13 }
  0x19   : > { %926 = vmatpush3.msk.msra.mxu1 %vm427_vm3, %v1094_v6  ;;  %vm511_vm5 = vcmp.eq.s32.totalorder %v1191_v4, 7  ;;  %v894_v43 = vld [vmem:[%s283_s27] ss:$0 sm:$0xff]  ;;  %v545_v47 = vld [vmem:[%s1225_s16 + $0x10] sm:$0xff]  ;;  %v546_v48 = vld [vmem:[%s1225_s16 + $0x18] sm:$0xff]  ;;  %s274_s12 = scalar_lea.vmem [#allocation5], %s273_s29 }
  0x1a   : > { %938 = vmatprep.subr.mxu1 %v1091_v2  ;;  %v313_v9 = vmax.f32 %v312_v8, -2.7725887  ;;  %307 = vst.msk [vmem:[#allocation3] sm:$0x1] %vm306_vm9, %v1091_v2  ;;  %s766_s14 = sshll.u32 %s274_s12, 4  ;;  %s751_s21 = scalar_lea.sflag [#allocation6], %s273_s29  ;;  %s1269_s14 = int_to_ptr.vmem [resolvable:$true] %s766_s14 }
  0x1b   : > { %s1013_s16 = scalar_lea.vmem %s1269_s14, 16 }
  0x1c   : > { %v314_v11 = vsub.f32 %v312_v8, %v313_v9  ;;  %v317_v12 = vsub.f32 -2.7725887, %v313_v9  ;;  %v540_v50 = vld [vmem:[#allocation2 + $0x8] sm:$0xff]  ;;  %v539_v53 = vld [vmem:[#allocation2] sm:$0xff]  ;;  %p1014_p12 = scmp.ne.s32.totalorder %s1269_s14, %s1013_s16 }
  0x1d   : > { %v542_v58 = vld [vmem:[#allocation2 + $0x18] sm:$0xff]  ;;  %v541_v61 = vld [vmem:[#allocation2 + $0x10] sm:$0xff] }
  0x1e   : > { %v328_v10 = vld [vmem:[#allocation4] sm:$0x1]  ;;  %v315_v13 = vmul.f32 1.442695, %v314_v11  ;;  %v318_v14 = vmul.f32 1.442695, %v317_v12  ;;  %p1015_p13 = pnand %p1014_p12, %p1168_p4 }
  0x1f   : > { %332 = vperm.xlu0 %1004, %v328_v10  }
  0x20   : > { %1005 = vpow2.f32 %v315_v13  ;;  %p1016_p0 = pneg %p1015_p13 }
  0x21   : > { %1007 = vpow2.f32 %v318_v14  ;;  %v652_v49 = vld [vmem:[#allocation3] sm:$0x1] }
  0x23   : > { %503 = vperm.xlu0 %1004, %v1095_v15  }
  0x2d   : > { %v1006_v16 = vpop.eup %1005 }
  0x2e   : > { %v1008_v17 = vpop.eup %1007 }
  0x2f   : > { %v320_v18 = vadd.f32 %v1008_v17, %v1006_v16 }
  0x31   : > { %1009 = vlog2.f32 %v320_v18 }
  0x3e   : > { %v1010_v19 = vpop.eup %1009 }
  0x3f   : > { %v322_v20 = vmul.f32 0.6931472, %v1010_v19 }
  0x41   : > { %v323_v21 = vadd.f32 %v322_v20, %v313_v9 }
  0x43   : > { %v324_v22 = vmul.f32 1.442695, %v323_v21  ;;  %v326_v42 = vsub.f32 %v310_v7, %v323_v21 }
  0x45   : > { %1011 = vpow2.f32 %v324_v22  ;;  %v327_v45 = vmax.f32 %v326_v42, -1e+30 }
  0x52   : > { %v1012_v23 = vpop.eup %1011 }
  0x53   : > { %923 = vmatmul.mubr.msk.f32.vlgmr.msra.gmra.mxu0 %vm301_vm0, %v1012_v23  ;;  %928 = vmatmul.mubr.msk.f32.vlgmr.msra.gmra.mxu1 %vm301_vm0, %v1012_v23 }
  0x54   : > { %940 = vmatprep.mubr.msk.f32.mxu1 %vm1092_vm2, %v1091_v2  ;;  %932 = vmatprep.mubr.msk.f32.mxu0 %vm301_vm0, %v543_v28 }
  0x9a   : > { %v333_v24 = vpop.permute.xlu0 %332 }
  0x9b   : > { %v338_v27 = vrot.slane %v333_v24, %v337_v25 }
  0x9e   : > { %v504_v26 = vpop.permute.xlu0 %503 }
  0x9f   : > { %v509_v31 = vrot.slane %v504_v26, %v337_v25 }
 0x113   : > { %v409_v29 = vpop.f32.mrf.mxu0  ;;  %v496_v30 = vpop.f32.mrf.mxu1 }
 0x114   : > { %v410_v32 = vadd.f32 %v409_v29, %v338_v27  ;;  %v497_v33 = vadd.f32 %v496_v30, %v338_v27 }
 0x115   : > { %v929_v34 = vpop.f32.mrf.mxu1  ;;  %v924_v35 = vpop.f32.mrf.mxu0 }
 0x116   : > { %414 = vrot.lane.b32.xlu0 %v410_v32, %s1096_s17  ;;  %v510_v36 = vsel %vm500_vm4, %v509_v31, %v497_v33  ;;  %v513_v38 = vsel %vm511_vm5, inf, %v410_v32  ;;  %s1097_s17 = smov [#allocation5]  }
 0x117   : > { %v517_v37 = vrot.slane %v510_v36, %v337_v25  ;;  %v531_v39 = vrot.slane %v513_v38, %v337_v25  ;;  %s1017_s24 = sshll.u32 %s1097_s17, 4  ;;  %s1018_s24 = int_to_ptr.vmem [resolvable:$false] %s1017_s24 }
 0x118   : > { %s1019_s25 = scalar_lea.vmem %s1018_s24, 32  ;;  %p1020_p1 = scmp.lt.s32.totalorder %s1269_s14, %s1018_s24 }
 0x119   : > { %519 = vbcast.lane.b32.xlu1 %v517_v37, 256  ;;  %p1021_p2 = scmp.lt.s32.totalorder %s1019_s25, %s1013_s16 }
 0x11b   : > { %p1022_p3 = por %p1021_p2, %p1020_p1 }
 0x11d   : > { %533 = vbcast.lane.b32.xlu1 %v531_v39, 256  ;;  %p1023_p5 = pnand %p1022_p3, %p1016_p0 }
 0x188   : > { %v415_v40 = vpop.permute.xlu0 %414 }
 0x189   : > { %418 = vst.msk [vmem:[#allocation4] sm:$0x1] %vm308_vm1, %v415_v40 }
 0x18b   : > { %v520_v41 = vpop.permute.xlu1 %519 }
 0x18c   : > { %vm527_vm6 = vcmp.gt.f32.partialorder %v894_v43, %v520_v41 }
 0x18f   : > { %v534_v44 = vpop.permute.xlu1 %533 }
 0x190   : > { %vm535_vm7 = vcmp.le.f32.partialorder %v894_v43, %v534_v44 }
 0x191   : > { %vm536_vm8 = vmand %vm527_vm6, %vm535_vm7 }
 0x192   : > { %930 = vmatprep.subr.msk.mxu0 %vm536_vm8, %v1094_v6  ;;  %939 = vmatpush3.msk.msra.mxu1 %vm536_vm8, %v1094_v6 }
 0x193   : > { %931 = vmatpush3.msk.msra.mxu0 %vm536_vm8, %v1094_v6  ;;  %941 = vmatmul.mubr.msk.f32.vlgmr.msra.gmra.mxu1 %vm301_vm0, %v327_v45 }
 0x194   : > { %933 = vmatmul.mubr.msk.f32.vlgmr.msra.gmra.mxu0 %vm301_vm0, %v544_v46 }
 0x195   : > { %935 = vmatprep.mubr.msk.f32.mxu0 %vm301_vm0, %v545_v47 }
 0x198   : > { %936 = vmatmul.mubr.msk.f32.gmra.mxu0 %vm301_vm0, %v546_v48 }
 0x253   : > { %v722_v51 = vpop.f32.mrf.mxu1 }
 0x254   : > { %v934_v52 = vpop.f32.mrf.mxu0  ;;  %v726_v54 = vadd.f32 %v722_v51, %v652_v49 }
 0x255   : > { %v645_v55 = vadd.f32 %v934_v52, %v540_v50  ;;  %v942_v56 = vpop.f32.mrf.mxu1 }
 0x256   : > { %v625_v57 = vpop.f32.mrf.mxu0  ;;  %728 = vst.msk [vmem:[#allocation3] sm:$0x1] %vm306_vm9, %v726_v54 }
 0x257   : > { %649 = vst.msk [vmem:[#allocation2 + $0x8] sm:$0xff] %vm301_vm0, %v645_v55  ;;  %v644_v59 = vadd.f32 %v625_v57, %v539_v53 }
 0x258   : > { %v937_v60 = vpop.f32.mrf.mxu0 }
 0x259   : > { %648 = vst.msk [vmem:[#allocation2] sm:$0xff] %vm301_vm0, %v644_v59  ;;  %v647_v62 = vadd.f32 %v937_v60, %v542_v58 }
 0x25a   : > { %v635_v63 = vpop.f32.mrf.mxu0 }
 0x25b   : > { %651 = vst.msk [vmem:[#allocation2 + $0x18] sm:$0xff] %vm301_vm0, %v647_v62  ;;  %v646_v0 = vadd.f32 %v635_v63, %v541_v61 }
 0x25d   : > { %650 = vst.msk [vmem:[#allocation2 + $0x10] sm:$0xff] %vm301_vm0, %v646_v0  ;;  %v740_v1 = vld [vmem:[#allocation3] sm:$0x1] }
 0x25e   : > { %v733_v2 = vld [vmem:[#allocation2 + $0x8] sm:$0xff]  ;;  %vm741_vm10 = vcmp.le.f32.partialorder %v740_v1, -1e+29  ;;  %v903_v3 = vadd.f32 -2.0794415, %v740_v1 }
 0x25f   : > { %737 = vst.msk [vmem:[%s1257_s10 + $0x8] sm:$0xff] %vm301_vm0, %v733_v2 }
 0x260   : > { %v732_v4 = vld [vmem:[#allocation2] sm:$0xff]  ;;  %v743_v5 = vsel %vm741_vm10, -inf, %v903_v3 }
 0x261   : > { %736 = vst.msk [vmem:[%s1257_s10] sm:$0xff] %vm301_vm0, %v732_v4 }
 0x262   : > { %744 = vst.msk [vmem:[%s274_s12] sm:$0x1] %vm306_vm9, %v743_v5  ;;  %v735_v6 = vld [vmem:[#allocation2 + $0x18] sm:$0xff] }
 0x263   : > { %1026 = shalt.err (!%p1023_p5)
}
 0x264   : > { %s1027_s27 = scalar_lea.hbm %s1267_s15, 16  ;;  %s1031_s8 = scalar_lea.hbm %s1325_s5, 32 }
 0x265   : > { %p1028_p6 = scmp.ne.s32.totalorder %s1267_s15, %s1027_s27  ;;  %p1032_p10 = scmp.lt.s32.totalorder %s1267_s15, %s1325_s5 }
 0x266   : > { %p1033_p11 = scmp.lt.s32.totalorder %s1031_s8, %s1027_s27 }
 0x267   : > { %p1029_p7 = pnand %p1028_p6, %p1168_p4 }
 0x268   : > { %p1034_p12 = por %p1033_p11, %p1032_p10 }
 0x269   : > { %p1030_p9 = pneg %p1029_p7 }
 0x26b   : > { %p1035_p13 = pnand %p1034_p12, %p1030_p9 }
 0x26d   : > { %1038 = shalt.err (!%p1035_p13)
}
 0x26e   : > { %943 = dma.vmem_to_hbm [thread:$0]  (%p1168_p4), %s1269_s14, 16, %s1267_s15, %s751_s21   ;;  %739 = vst.msk [vmem:[%s1257_s10 + $0x18] sm:$0xff] %vm301_vm0, %v735_v6  ;;  %v734_v7 = vld [vmem:[#allocation2 + $0x10] sm:$0xff] }
 0x26f   : > { %738 = vst.msk [vmem:[%s1257_s10 + $0x10] sm:$0xff] %vm301_vm0, %v734_v7 }
 0x270 PF: > { %p949_p0 = scmp.ge.s32.totalorder %s1089_s23, 2  ;;  %s786_s9 = sand.u32 1, %s1069_s18  }
 0x271   : > { %s787_s28 = scalar_lea.sflag [#allocation6], %s786_s9 }
 0x272   : > { %p946_p1 = pnand %p949_p0, %p1175_p8 }
 0x274   : > { %p947_p2 = pneg %p946_p1 }
 0x276   : > { %1064 = dma.done.wait (%p947_p2), %s787_s28, 16  }
 0x277   : > { %1066 = vsyncadd (%p947_p2), %s787_s28, 4294967280  ;;  %s19_s23 = sadd.s32 1, %s1089_s23   ;;  %s1328_s18 = smov %s1073_s19 }
 0x278   : > { %p16_p4 = scmp.ge.s32.totalorder %s19_s23, 4   ;;  %s1329_s19 = smov %s1077_s20 }
 0x279   : > { %s1330_s20 = smov %s1181_s6  ;;  %s1331_s21 = smov %s1085_s22 }
 0x27a   : > { %s1332_s22 = smov %s1334_s26  ;;  %18 = sbr.rel (!%p16_p4) target bundleno = 4 (0x4), region = 97 }
 0x27f   :  { %791 = vsyncpa [#allocation6], 1 }
 0x280   :  { %793 = vsyncpa [#allocation6 + $0x1], 1 }

</bundles_post_ra>
